<compile_context>
chip_gen: v6e
topology: v6e:2x2x1
jax: 0.10.0
libtpu: 0.0.40
codegen_flags: <defaults>
</compile_context>

<pallas_src>
import numpy as np
import jax
import jax.numpy as jnp
from jax.experimental import pallas as pl
from jax.experimental.pallas import tpu as pltpu

# ----------------------------- constants -----------------------------------
CONTRAST = 1.2
GRAY_W = (0.2989, 0.587, 0.114)                 # torchvision rgb_to_grayscale
IMAGENET_MEAN = (0.485, 0.456, 0.406)
IMAGENET_STD = (0.229, 0.224, 0.225)

B, C = 2, 3                                     # batch, RGB channels
H_IN, W_IN = 32, 32                             # raw image size
H, W = 16, 16                                   # resize target (small test)
HW = H * W                                      # 256 -> lane-dense (2 x 128)
HW_IN = H_IN * W_IN                             # 1024
BC = B * C
HIDDEN = 32                                     # stand-in head width


# ------------------- host-side precomputed operators ------------------------
def _bilinear_matrix(out_size: int, in_size: int) -> np.ndarray:
    """Row-stochastic 1-D bilinear weights (align_corners=False, no antialias)."""
    m = np.zeros((out_size, in_size), dtype=np.float64)
    scale = in_size / out_size
    for o in range(out_size):
        s = (o + 0.5) * scale - 0.5
        i0 = int(np.floor(s))
        frac = s - i0
        lo = min(max(i0, 0), in_size - 1)
        hi = min(max(i0 + 1, 0), in_size - 1)
        m[o, lo] += 1.0 - frac
        m[o, hi] += frac
    return m.astype(np.float32)


_RH_NP = _bilinear_matrix(H, H_IN)              # (H, H_IN)
_RW_NP = _bilinear_matrix(W, W_IN).T            # (W_IN, W)
# fused 2-D resize operator: R2[i*W_IN + j, h*W + w] = RH[h, i] * RW[j, w]
_R2_NP = np.kron(_RH_NP.T, _RW_NP)              # (HW_IN, HW) ~ 1 MB f32

# grayscale-mean mixing matrix: gm_add[r] = (1-CONTRAST) * gray_mean(image of row r)
_GM_NP = np.zeros((BC, BC), dtype=np.float32)
for _r in range(BC):
    for _rp in range(BC):
        if _r // C == _rp // C:
            _GM_NP[_r, _rp] = (1.0 - CONTRAST) * GRAY_W[_rp % C] / HW

R2 = jnp.asarray(_R2_NP)
GM = jnp.asarray(_GM_NP)
RH = jnp.asarray(_RH_NP)
RW = jnp.asarray(_RW_NP)


# ------------------------------ kernel --------------------------------------
def fused_transform_head_kernel(x_ref, r2_ref, gm_ref, sex_ref, w1_ref,
                                headp_ref, out_ref, zbuf):
    """Single invocation (no grid): whole batch resident in VMEM.

    x_ref     : (B*C, H_IN*W_IN)  raw image planes, row r = b*C + c
    r2_ref    : (H_IN*W_IN, H*W)  fused separable bilinear-resize operator
    gm_ref    : (B*C, B*C)        grayscale-mean mixing matrix (contrast blend)
    sex_ref   : (B, 1)            sex covariate
    w1_ref    : (C*H*W, HIDDEN)   head weights (ImageNet normalize folded in)
    headp_ref : (4, HIDDEN)       rows: b1 (norm-folded), ws, w2^T, [b2, 0, ...]
    out_ref   : (B, 1)
    zbuf      : (B, C*H*W)        VMEM scratch: lane-dense per-image activations
    """
    # 1) resize transform: one MXU matmul over all B*C planes.
    resized = jnp.dot(x_ref[...], r2_ref[...],
                      preferred_element_type=jnp.float32)            # (B*C, HW)

    # 2) adjust_contrast(1.2): per-image grayscale mean via a single lane
    #    reduction + tiny mixing matmul, then blend + clamp to [0, 1].
    row_sum = jnp.sum(resized, axis=1, keepdims=True)                 # (B*C, 1)
    gm_add = jnp.dot(gm_ref[...], row_sum,
                     preferred_element_type=jnp.float32)              # (B*C, 1)
    y = jnp.clip(CONTRAST * resized + gm_add, 0.0, 1.0)               # (B*C, HW)

    # 3) normalize transform: folded into w1 / b1 on the host (affine ∘ linear).

    # 4) stand-in head: assemble (B, C*HW) lane-dense activations (static 128-
    #    aligned stores) and do a single K = C*HW contraction on the MXU.
    for b in range(B):
        for c in range(C):
            r = b * C + c
            zbuf[pl.ds(b, 1), pl.ds(c * HW, HW)] = y[r:r + 1, :]
    z = zbuf[...]                                                     # (B, C*HW)

    h = jnp.dot(z, w1_ref[...], preferred_element_type=jnp.float32)   # (B, HIDDEN)
    b1 = headp_ref[0:1, :]
    ws = headp_ref[1:2, :]
    w2t = headp_ref[2:3, :]
    b2 = headp_ref[3:4, 0:1]
    h = h + b1 + sex_ref[...] * ws
    h = jnp.maximum(h, 0.0)
    out_ref[...] = jnp.sum(h * w2t, axis=1, keepdims=True) + b2       # (B, 1)


# ------------------------------ wrapper --------------------------------------
def model_with_transforms(x_nchw, sex, params):
    """x_nchw: (B, C, H_IN, W_IN) float32 in [0,1]; sex: (B, 1) float32."""
    w1, ws, b1, w2, b2 = params

    # Fold ImageNet normalize (per-channel affine) into the first linear layer.
    inv_std = 1.0 / jnp.asarray(IMAGENET_STD, jnp.float32).reshape(C, 1, 1)
    mean = jnp.asarray(IMAGENET_MEAN, jnp.float32).reshape(C, 1, 1)
    w1_scaled = w1 * inv_std                                      # (C, HW, HIDDEN)
    w1f = w1_scaled.reshape(C * HW, HIDDEN)                       # (C*HW, HIDDEN)
    b1f = b1 - jnp.sum(mean * w1_scaled, axis=(0, 1))[None, :]    # (1, HIDDEN)

    # Pack the small head params into one VMEM input (fewer DMAs).
    headp = jnp.concatenate(
        [b1f, ws, w2.reshape(1, HIDDEN),
         jnp.pad(b2, ((0, 0), (0, HIDDEN - 1)))], axis=0)          # (4, HIDDEN)

    x_rows = x_nchw.reshape(BC, HW_IN).astype(jnp.float32)         # (B*C, 1024)

    vmem = pl.BlockSpec(memory_space=pltpu.MemorySpace.VMEM)
    return pl.pallas_call(
        fused_transform_head_kernel,
        out_shape=jax.ShapeDtypeStruct((B, 1), jnp.float32),
        in_specs=[vmem, vmem, vmem, vmem, vmem, vmem],
        out_specs=vmem,
        scratch_shapes=[pltpu.VMEM((B, C * HW), jnp.float32)],
    )(x_rows, R2, GM, sex, w1f, headp)


model_fn = jax.jit(model_with_transforms)


# ----------------------- pure-JAX reference (for checking) -------------------
def reference(x_nchw, sex, params):
    w1, ws, b1, w2, b2 = params
    # same separable bilinear weights, unfused code path
    t = jnp.einsum('hi,bciw->bchw', RH, x_nchw)                    # (B, C, H, W_IN)
    xr = jnp.einsum('bchw,wj->bchj', t, RW)                        # (B, C, H, W)
    gray = GRAY_W[0] * xr[:, 0] + GRAY_W[1] * xr[:, 1] + GRAY_W[2] * xr[:, 2]
    gmean = gray.mean(axis=(-2, -1)).reshape(B, 1, 1, 1)
    xb = jnp.clip(CONTRAST * xr + (1.0 - CONTRAST) * gmean, 0.0, 1.0)
    mean = jnp.asarray(IMAGENET_MEAN, jnp.float32).reshape(1, C, 1, 1)
    std = jnp.asarray(IMAGENET_STD, jnp.float32).reshape(1, C, 1, 1)
    xn = ((xb - mean) / std).reshape(B, C, HW)
    h = jnp.einsum('bcp,cpn->bn', xn, w1) + b1 + sex * ws
    h = jnp.maximum(h, 0.0)
    return h @ w2 + b2


# ------------------------------ main -----------------------------------------
if __name__ == "__main__":
    key = jax.random.PRNGKey(0)
    kx, ksex, k1, k2, k3, k4, k5 = jax.random.split(key, 7)

    x = jax.random.uniform(kx, (B, C, H_IN, W_IN), jnp.float32)     # [0, 1] image
    sex = jax.random.bernoulli(ksex, 0.5, (B, 1)).astype(jnp.float32)

    # deterministic synthetic parameters for the stand-in head
    w1 = 0.02 * jax.random.normal(k1, (C, HW, HIDDEN), jnp.float32)
    ws = 0.10 * jax.random.normal(k2, (1, HIDDEN), jnp.float32)
    b1 = 0.05 * jax.random.normal(k3, (1, HIDDEN), jnp.float32)
    w2 = 0.10 * jax.random.normal(k4, (HIDDEN, 1), jnp.float32)
    b2 = 0.05 * jax.random.normal(k5, (1, 1), jnp.float32)
    params = (w1, ws, b1, w2, b2)

    out = jax.block_until_ready(model_fn(x, sex, params))
    ref = reference(x, sex, params)

    assert out.shape == (B, 1)
    assert jnp.allclose(out, ref, rtol=1e-4, atol=1e-5), (out, ref)

    print("KERNEL_OK")
</pallas_src>

<mosaic_0001>
module attributes {stable_mosaic.version = 11 : i64} {
  func.func @fused_transform_head_kernel(%arg0: memref<6x1024xf32, #tpu.memory_space<vmem>>, %arg1: memref<1024x256xf32, #tpu.memory_space<vmem>>, %arg2: memref<6x6xf32, #tpu.memory_space<vmem>>, %arg3: memref<2x1xf32, #tpu.memory_space<vmem>>, %arg4: memref<768x32xf32, #tpu.memory_space<vmem>>, %arg5: memref<4x32xf32, #tpu.memory_space<vmem>>, %arg6: memref<2x1xf32, #tpu.memory_space<vmem>>, %arg7: memref<2x768xf32, #tpu.memory_space<vmem>>) attributes {dimension_semantics = [], scalar_prefetch = 0 : i64, scratch_operands = 1 : i64, tpu.core_type = #tpu.core_type<tc>} {
    %c0 = arith.constant 0 : index
    %c0_0 = arith.constant 0 : index
    %0 = vector.load %arg0[%c0, %c0_0] : memref<6x1024xf32, #tpu.memory_space<vmem>>, vector<6x1024xf32>
    %c0_1 = arith.constant 0 : index
    %c0_2 = arith.constant 0 : index
    %1 = vector.load %arg1[%c0_1, %c0_2] : memref<1024x256xf32, #tpu.memory_space<vmem>>, vector<1024x256xf32>
    %cst = arith.constant dense<0.000000e+00> : vector<6x256xf32>
    %2 = tpu.matmul %0, %1, %cst {dimension_numbers = #tpu.dot_dimension_numbers<[1], [0], [0], [1], [0, 0, 1, 1], [], []>} : vector<6x1024xf32>, vector<1024x256xf32>, vector<6x256xf32> -> vector<6x256xf32>
    %cst_3 = arith.constant dense<0.000000e+00> : vector<6xf32>
    %3 = vector.multi_reduction <add>, %2, %cst_3 [1] : vector<6x256xf32> to vector<6xf32>
    %4 = vector.shape_cast %3 : vector<6xf32> to vector<6x1xf32>
    %c0_4 = arith.constant 0 : index
    %c0_5 = arith.constant 0 : index
    %5 = vector.load %arg2[%c0_4, %c0_5] : memref<6x6xf32, #tpu.memory_space<vmem>>, vector<6x6xf32>
    %cst_6 = arith.constant dense<0.000000e+00> : vector<6x1xf32>
    %6 = tpu.matmul %5, %4, %cst_6 {dimension_numbers = #tpu.dot_dimension_numbers<[1], [0], [0], [1], [0, 0, 1, 1], [], []>} : vector<6x6xf32>, vector<6x1xf32>, vector<6x1xf32> -> vector<6x1xf32>
    %cst_7 = arith.constant 1.200000e+00 : f32
    %7 = vector.broadcast %cst_7 : f32 to vector<6x256xf32>
    %8 = arith.mulf %7, %2 : vector<6x256xf32>
    %9 = vector.broadcast %6 : vector<6x1xf32> to vector<6x256xf32>
    %10 = arith.addf %8, %9 : vector<6x256xf32>
    %cst_8 = arith.constant 0.000000e+00 : f32
    %cst_9 = arith.constant 1.000000e+00 : f32
    %11 = vector.broadcast %cst_8 : f32 to vector<6x256xf32>
    %12 = arith.maximumf %11, %10 : vector<6x256xf32>
    %13 = vector.broadcast %cst_9 : f32 to vector<6x256xf32>
    %14 = arith.minimumf %13, %12 : vector<6x256xf32>
    %15 = vector.extract_strided_slice %14 {offsets = [0, 0], sizes = [1, 256], strides = [1, 1]} : vector<6x256xf32> to vector<1x256xf32>
    %c0_10 = arith.constant 0 : index
    %c0_11 = arith.constant 0 : index
    %16 = vector.load %arg7[%c0_10, %c0_11] : memref<2x768xf32, #tpu.memory_space<vmem>>, vector<1x256xf32>
    tpu.vector_store %arg7[%c0_10, %c0_11], %15 {strides = array<i32>} : memref<2x768xf32, #tpu.memory_space<vmem>>, vector<1x256xf32>,
    %17 = vector.extract_strided_slice %14 {offsets = [1, 0], sizes = [1, 256], strides = [1, 1]} : vector<6x256xf32> to vector<1x256xf32>
    %c0_12 = arith.constant 0 : index
    %c256 = arith.constant 256 : index
    %18 = vector.load %arg7[%c0_12, %c256] : memref<2x768xf32, #tpu.memory_space<vmem>>, vector<1x256xf32>
    tpu.vector_store %arg7[%c0_12, %c256], %17 {strides = array<i32>} : memref<2x768xf32, #tpu.memory_space<vmem>>, vector<1x256xf32>,
    %19 = vector.extract_strided_slice %14 {offsets = [2, 0], sizes = [1, 256], strides = [1, 1]} : vector<6x256xf32> to vector<1x256xf32>
    %c0_13 = arith.constant 0 : index
    %c512 = arith.constant 512 : index
    %20 = vector.load %arg7[%c0_13, %c512] : memref<2x768xf32, #tpu.memory_space<vmem>>, vector<1x256xf32>
    tpu.vector_store %arg7[%c0_13, %c512], %19 {strides = array<i32>} : memref<2x768xf32, #tpu.memory_space<vmem>>, vector<1x256xf32>,
    %21 = vector.extract_strided_slice %14 {offsets = [3, 0], sizes = [1, 256], strides = [1, 1]} : vector<6x256xf32> to vector<1x256xf32>
    %c1 = arith.constant 1 : index
    %c0_14 = arith.constant 0 : index
    %22 = vector.load %arg7[%c1, %c0_14] : memref<2x768xf32, #tpu.memory_space<vmem>>, vector<1x256xf32>
    tpu.vector_store %arg7[%c1, %c0_14], %21 {strides = array<i32>} : memref<2x768xf32, #tpu.memory_space<vmem>>, vector<1x256xf32>,
    %23 = vector.extract_strided_slice %14 {offsets = [4, 0], sizes = [1, 256], strides = [1, 1]} : vector<6x256xf32> to vector<1x256xf32>
    %c1_15 = arith.constant 1 : index
    %c256_16 = arith.constant 256 : index
    %24 = vector.load %arg7[%c1_15, %c256_16] : memref<2x768xf32, #tpu.memory_space<vmem>>, vector<1x256xf32>
    tpu.vector_store %arg7[%c1_15, %c256_16], %23 {strides = array<i32>} : memref<2x768xf32, #tpu.memory_space<vmem>>, vector<1x256xf32>,
    %25 = vector.extract_strided_slice %14 {offsets = [5, 0], sizes = [1, 256], strides = [1, 1]} : vector<6x256xf32> to vector<1x256xf32>
    %c1_17 = arith.constant 1 : index
    %c512_18 = arith.constant 512 : index
    %26 = vector.load %arg7[%c1_17, %c512_18] : memref<2x768xf32, #tpu.memory_space<vmem>>, vector<1x256xf32>
    tpu.vector_store %arg7[%c1_17, %c512_18], %25 {strides = array<i32>} : memref<2x768xf32, #tpu.memory_space<vmem>>, vector<1x256xf32>,
    %c0_19 = arith.constant 0 : index
    %c0_20 = arith.constant 0 : index
    %27 = vector.load %arg7[%c0_19, %c0_20] : memref<2x768xf32, #tpu.memory_space<vmem>>, vector<2x768xf32>
    %c0_21 = arith.constant 0 : index
    %c0_22 = arith.constant 0 : index
    %28 = vector.load %arg4[%c0_21, %c0_22] : memref<768x32xf32, #tpu.memory_space<vmem>>, vector<768x32xf32>
    %cst_23 = arith.constant dense<0.000000e+00> : vector<2x32xf32>
    %29 = tpu.matmul %27, %28, %cst_23 {dimension_numbers = #tpu.dot_dimension_numbers<[1], [0], [0], [1], [0, 0, 1, 1], [], []>} : vector<2x768xf32>, vector<768x32xf32>, vector<2x32xf32> -> vector<2x32xf32>
    %c0_24 = arith.constant 0 : index
    %c0_25 = arith.constant 0 : index
    %30 = vector.load %arg5[%c0_24, %c0_25] : memref<4x32xf32, #tpu.memory_space<vmem>>, vector<1x32xf32>
    %c1_26 = arith.constant 1 : index
    %c0_27 = arith.constant 0 : index
    %31 = vector.load %arg5[%c1_26, %c0_27] : memref<4x32xf32, #tpu.memory_space<vmem>>, vector<1x32xf32>
    %c2 = arith.constant 2 : index
    %c0_28 = arith.constant 0 : index
    %32 = vector.load %arg5[%c2, %c0_28] : memref<4x32xf32, #tpu.memory_space<vmem>>, vector<1x32xf32>
    %c3 = arith.constant 3 : index
    %c0_29 = arith.constant 0 : index
    %33 = vector.load %arg5[%c3, %c0_29] : memref<4x32xf32, #tpu.memory_space<vmem>>, vector<1x1xf32>
    %34 = vector.broadcast %30 : vector<1x32xf32> to vector<2x32xf32>
    %35 = arith.addf %29, %34 : vector<2x32xf32>
    %c0_30 = arith.constant 0 : index
    %c0_31 = arith.constant 0 : index
    %36 = vector.load %arg3[%c0_30, %c0_31] : memref<2x1xf32, #tpu.memory_space<vmem>>, vector<2x1xf32>
    %37 = vector.broadcast %36 : vector<2x1xf32> to vector<2x32xf32>
    %38 = vector.broadcast %31 : vector<1x32xf32> to vector<2x32xf32>
    %39 = arith.mulf %37, %38 : vector<2x32xf32>
    %40 = arith.addf %35, %39 : vector<2x32xf32>
    %cst_32 = arith.constant 0.000000e+00 : f32
    %41 = vector.broadcast %cst_32 : f32 to vector<2x32xf32>
    %42 = arith.maximumf %40, %41 : vector<2x32xf32>
    %43 = vector.broadcast %32 : vector<1x32xf32> to vector<2x32xf32>
    %44 = arith.mulf %42, %43 : vector<2x32xf32>
    %cst_33 = arith.constant dense<0.000000e+00> : vector<2xf32>
    %45 = vector.multi_reduction <add>, %44, %cst_33 [1] : vector<2x32xf32> to vector<2xf32>
    %46 = vector.shape_cast %45 : vector<2xf32> to vector<2x1xf32>
    %47 = vector.broadcast %33 : vector<1x1xf32> to vector<2x1xf32>
    %48 = arith.addf %46, %47 : vector<2x1xf32>
    %c0_34 = arith.constant 0 : index
    %c0_35 = arith.constant 0 : index
    %49 = vector.load %arg6[%c0_34, %c0_35] : memref<2x1xf32, #tpu.memory_space<vmem>>, vector<2x1xf32>
    tpu.vector_store %arg6[%c0_34, %c0_35], %48 {strides = array<i32>} : memref<2x1xf32, #tpu.memory_space<vmem>>, vector<2x1xf32>,
    return
  }
}

</mosaic_0001>

<bundles_post_ra>
// kernel: model_with_transforms.1
= control target key start
LH: loop header
LB: loop body
LE: loop exit
PB: predicated region body
PF: predicated region fallthrough
CT: control target
= control target key end

     0   :  { %11 = vsyncpa [#allocation4], 0  ;;  %s1288_s21 = smov [#allocation3]   ;;  %s1696_s0 = inlined_call_operand.vmem [shape: f32[6,1024], index: 0, kind: input, shape index: {}]   ;;  %s1697_s1 = inlined_call_operand.hbm [shape: f32[1024,256], index: 1, kind: input, shape index: {}]   ;;  %s1698_s2 = inlined_call_operand.vmem [shape: f32[6,6], index: 2, kind: input, shape index: {}]   ;;  %s1699_s3 = inlined_call_operand.vmem [shape: f32[2,1], index: 3, kind: input, shape index: {}]   ;;  %s1700_s4 = inlined_call_operand.vmem [shape: f32[768,32], index: 4, kind: input, shape index: {}]   ;;  %s1701_s5 = inlined_call_operand.vmem [shape: f32[4,32], index: 5, kind: input, shape index: {}]   ;;  %s1702_s6 = inlined_call_operand.vmem [shape: f32[2,1], index: 6, kind: output, shape index: {}]  }
   0x1   :  { %s19_s22 = sshll.u32 %s1288_s21, 4  ;;  %s20_s22 = int_to_ptr.vmem [resolvable:$true] %s19_s22 }
   0x2   :  { %s1274_s23 = scalar_lea.vmem %s20_s22, 32768  ;;  %p1279_p1 = scmp.lt.s32.totalorder %s20_s22, %s20_s22 }
   0x3   :  { %p1275_p0 = scmp.ne.s32.totalorder %s20_s22, %s1274_s23  ;;  %p1280_p2 = scmp.lt.s32.totalorder %s1274_s23, %s1274_s23 }
   0x5   :  { %p1281_p3 = por %p1280_p2, %p1279_p1 }
   0x7   :  { %p1282_p4 = pnand %p1281_p3, %p1275_p0 }
   0x9   :  { %1285 = shalt.err (!%p1282_p4)
}
   0xa   :  { %s1289_s24 = smov 256   ;;  %s1290_s25 = smov 16  }
   0xb   :  { %25 = dma.hbm_to_vmem [thread:$0]  %s1697_s1, 32768, %s20_s22, [#allocation4], %s1289_s24, %s1289_s24, %s1290_s25  }
   0xc   :  { %1286 = dma.done.wait [#allocation4], 32768  }
   0xd   :  { %1287 = vsyncadd [#allocation4], 4294934528  ;;  %v76_v0 = vld [vmem:[#allocation3 + $0xf8] sm:$0xff]  ;;  %v75_v2 = vld [vmem:[#allocation3 + $0xf0] sm:$0xff]  ;;  %vm585_vm0 = vcmask 1045504   ;;  %vm1292_vm1 = vmmov 0  }
   0xe   :  { %v140_v1 = vld [vmem:[#allocation3 + $0x2f8] sm:$0xff]  ;;  %301 = vmatprep.subr.mxu0 %v76_v0  ;;  %v139_v3 = vld [vmem:[#allocation3 + $0x2f0] sm:$0xff]  ;;  %v74_v4 = vld [vmem:[#allocation3 + $0xe8] sm:$0xff]  ;;  %vm592_vm2 = vcmask 48128   ;;  %vm1120_vm4 = vcmask 254976   ;;  %vm1129_vm5 = vcmask 1024  }
   0xf   :  { %372 = vmatprep.subr.mxu1 %v140_v1  ;;  %v138_v5 = vld [vmem:[#allocation3 + $0x2e8] sm:$0xff]  ;;  %302 = vmatpush1.msra.mxu0 %v75_v2  ;;  %v73_v6 = vld [vmem:[#allocation3 + $0xe0] sm:$0xff]  ;;  %v72_v8 = vld [vmem:[#allocation3 + $0xd8] sm:$0xff] }
  0x10   :  { %373 = vmatpush1.msra.mxu1 %v139_v3  ;;  %v137_v7 = vld [vmem:[#allocation3 + $0x2e0] sm:$0xff]  ;;  %303 = vmatprep.subr.mxu0 %v74_v4  ;;  %v136_v9 = vld [vmem:[#allocation3 + $0x2d8] sm:$0xff]  ;;  %v71_v10 = vld [vmem:[#allocation3 + $0xd0] sm:$0xff] }
  0x11   :  { %374 = vmatprep.subr.mxu1 %v138_v5  ;;  %v135_v11 = vld [vmem:[#allocation3 + $0x2d0] sm:$0xff]  ;;  %304 = vmatpush1.msra.mxu0 %v73_v6  ;;  %v70_v12 = vld [vmem:[#allocation3 + $0xc8] sm:$0xff]  ;;  %v69_v14 = vld [vmem:[#allocation3 + $0xc0] sm:$0xff] }
  0x12   :  { %375 = vmatpush1.msra.mxu1 %v137_v7  ;;  %v134_v13 = vld [vmem:[#allocation3 + $0x2c8] sm:$0xff]  ;;  %305 = vmatprep.subr.mxu0 %v72_v8  ;;  %v133_v15 = vld [vmem:[#allocation3 + $0x2c0] sm:$0xff]  ;;  %v68_v16 = vld [vmem:[#allocation3 + $0xb8] sm:$0xff] }
  0x13   :  { %376 = vmatprep.subr.mxu1 %v136_v9  ;;  %306 = vmatpush1.msra.mxu0 %v71_v10  ;;  %v132_v17 = vld [vmem:[#allocation3 + $0x2b8] sm:$0xff]  ;;  %v67_v18 = vld [vmem:[#allocation3 + $0xb0] sm:$0xff]  ;;  %v66_v20 = vld [vmem:[#allocation3 + $0xa8] sm:$0xff] }
  0x14   :  { %377 = vmatpush1.msra.mxu1 %v135_v11  ;;  %307 = vmatprep.subr.mxu0 %v70_v12  ;;  %v131_v19 = vld [vmem:[#allocation3 + $0x2b0] sm:$0xff]  ;;  %v130_v21 = vld [vmem:[#allocation3 + $0x2a8] sm:$0xff]  ;;  %v65_v22 = vld [vmem:[#allocation3 + $0xa0] sm:$0xff] }
  0x15   :  { %378 = vmatprep.subr.mxu1 %v134_v13  ;;  %308 = vmatpush1.msra.mxu0 %v69_v14  ;;  %v129_v23 = vld [vmem:[#allocation3 + $0x2a0] sm:$0xff]  ;;  %v64_v24 = vld [vmem:[#allocation3 + $0x98] sm:$0xff]  ;;  %v63_v26 = vld [vmem:[#allocation3 + $0x90] sm:$0xff] }
  0x16   :  { %379 = vmatpush1.msra.mxu1 %v133_v15  ;;  %309 = vmatprep.subr.mxu0 %v68_v16  ;;  %v128_v25 = vld [vmem:[#allocation3 + $0x298] sm:$0xff]  ;;  %v127_v27 = vld [vmem:[#allocation3 + $0x290] sm:$0xff]  ;;  %v62_v28 = vld [vmem:[#allocation3 + $0x88] sm:$0xff] }
  0x17   :  { %380 = vmatprep.subr.mxu1 %v132_v17  ;;  %310 = vmatpush1.msra.mxu0 %v67_v18  ;;  %v126_v29 = vld [vmem:[#allocation3 + $0x288] sm:$0xff]  ;;  %v61_v30 = vld [vmem:[#allocation3 + $0x80] sm:$0xff]  ;;  %v60_v32 = vld [vmem:[#allocation3 + $0x78] sm:$0xff] }
  0x18   :  { %381 = vmatpush1.msra.mxu1 %v131_v19  ;;  %311 = vmatprep.subr.mxu0 %v66_v20  ;;  %v125_v31 = vld [vmem:[#allocation3 + $0x280] sm:$0xff]  ;;  %v124_v33 = vld [vmem:[#allocation3 + $0x278] sm:$0xff]  ;;  %v59_v34 = vld [vmem:[#allocation3 + $0x70] sm:$0xff] }
  0x19   :  { %382 = vmatprep.subr.mxu1 %v130_v21  ;;  %312 = vmatpush1.msra.mxu0 %v65_v22  ;;  %v123_v35 = vld [vmem:[#allocation3 + $0x270] sm:$0xff]  ;;  %v58_v36 = vld [vmem:[#allocation3 + $0x68] sm:$0xff]  ;;  %v57_v38 = vld [vmem:[#allocation3 + $0x60] sm:$0xff] }
  0x1a   :  { %383 = vmatpush1.msra.mxu1 %v129_v23  ;;  %313 = vmatprep.subr.mxu0 %v64_v24  ;;  %v122_v37 = vld [vmem:[#allocation3 + $0x268] sm:$0xff]  ;;  %v121_v39 = vld [vmem:[#allocation3 + $0x260] sm:$0xff]  ;;  %v56_v40 = vld [vmem:[#allocation3 + $0x58] sm:$0xff] }
  0x1b   :  { %384 = vmatprep.subr.mxu1 %v128_v25  ;;  %314 = vmatpush1.msra.mxu0 %v63_v26  ;;  %v120_v41 = vld [vmem:[#allocation3 + $0x258] sm:$0xff]  ;;  %v55_v42 = vld [vmem:[#allocation3 + $0x50] sm:$0xff]  ;;  %v54_v44 = vld [vmem:[#allocation3 + $0x48] sm:$0xff] }
  0x1c   :  { %385 = vmatpush1.msra.mxu1 %v127_v27  ;;  %315 = vmatprep.subr.mxu0 %v62_v28  ;;  %v119_v43 = vld [vmem:[#allocation3 + $0x250] sm:$0xff]  ;;  %v118_v45 = vld [vmem:[#allocation3 + $0x248] sm:$0xff]  ;;  %v53_v46 = vld [vmem:[#allocation3 + $0x40] sm:$0xff] }
  0x1d   :  { %386 = vmatprep.subr.mxu1 %v126_v29  ;;  %316 = vmatpush1.msra.mxu0 %v61_v30  ;;  %v117_v47 = vld [vmem:[#allocation3 + $0x240] sm:$0xff]  ;;  %v52_v48 = vld [vmem:[#allocation3 + $0x38] sm:$0xff]  ;;  %v51_v50 = vld [vmem:[#allocation3 + $0x30] sm:$0xff] }
  0x1e   :  { %387 = vmatpush1.msra.mxu1 %v125_v31  ;;  %317 = vmatprep.subr.mxu0 %v60_v32  ;;  %v116_v49 = vld [vmem:[#allocation3 + $0x238] sm:$0xff]  ;;  %v115_v51 = vld [vmem:[#allocation3 + $0x230] sm:$0xff]  ;;  %v50_v52 = vld [vmem:[#allocation3 + $0x28] sm:$0xff] }
  0x1f   :  { %388 = vmatprep.subr.mxu1 %v124_v33  ;;  %318 = vmatpush1.msra.mxu0 %v59_v34  ;;  %v114_v53 = vld [vmem:[#allocation3 + $0x228] sm:$0xff]  ;;  %v49_v54 = vld [vmem:[#allocation3 + $0x20] sm:$0xff]  ;;  %v48_v56 = vld [vmem:[#allocation3 + $0x18] sm:$0xff] }
  0x20   :  { %389 = vmatpush1.msra.mxu1 %v123_v35  ;;  %319 = vmatprep.subr.mxu0 %v58_v36  ;;  %v113_v55 = vld [vmem:[#allocation3 + $0x220] sm:$0xff]  ;;  %v112_v57 = vld [vmem:[#allocation3 + $0x218] sm:$0xff]  ;;  %v47_v58 = vld [vmem:[#allocation3 + $0x10] sm:$0xff] }
  0x21   :  { %390 = vmatprep.subr.mxu1 %v122_v37  ;;  %320 = vmatpush1.msra.mxu0 %v57_v38  ;;  %v111_v59 = vld [vmem:[#allocation3 + $0x210] sm:$0xff]  ;;  %v46_v60 = vld [vmem:[#allocation3 + $0x8] sm:$0xff]  ;;  %v45_v62 = vld [vmem:[#allocation3] sm:$0xff] }
  0x22   :  { %391 = vmatpush1.msra.mxu1 %v121_v39  ;;  %321 = vmatprep.subr.mxu0 %v56_v40  ;;  %v110_v61 = vld [vmem:[#allocation3 + $0x208] sm:$0xff]  ;;  %v109_v63 = vld [vmem:[#allocation3 + $0x200] sm:$0xff]  ;;  %v108_v0 = vld [vmem:[#allocation3 + $0x1f8] sm:$0xff] }
  0x23   :  { %392 = vmatprep.subr.mxu1 %v120_v41  ;;  %322 = vmatpush1.msra.mxu0 %v55_v42  ;;  %v172_v1 = vld [vmem:[#allocation3 + $0x3f8] sm:$0xff]  ;;  %v107_v2 = vld [vmem:[#allocation3 + $0x1f0] sm:$0xff]  ;;  %v106_v4 = vld [vmem:[#allocation3 + $0x1e8] sm:$0xff] }
  0x24   :  { %393 = vmatpush1.msra.mxu1 %v119_v43  ;;  %323 = vmatprep.subr.mxu0 %v54_v44  ;;  %v171_v3 = vld [vmem:[#allocation3 + $0x3f0] sm:$0xff]  ;;  %v170_v5 = vld [vmem:[#allocation3 + $0x3e8] sm:$0xff]  ;;  %v105_v6 = vld [vmem:[#allocation3 + $0x1e0] sm:$0xff] }
  0x25   :  { %394 = vmatprep.subr.mxu1 %v118_v45  ;;  %324 = vmatpush1.msra.mxu0 %v53_v46  ;;  %v169_v7 = vld [vmem:[#allocation3 + $0x3e0] sm:$0xff]  ;;  %v104_v8 = vld [vmem:[#allocation3 + $0x1d8] sm:$0xff]  ;;  %v103_v10 = vld [vmem:[#allocation3 + $0x1d0] sm:$0xff] }
  0x26   :  { %395 = vmatpush1.msra.mxu1 %v117_v47  ;;  %325 = vmatprep.subr.mxu0 %v52_v48  ;;  %v168_v9 = vld [vmem:[#allocation3 + $0x3d8] sm:$0xff]  ;;  %v167_v11 = vld [vmem:[#allocation3 + $0x3d0] sm:$0xff]  ;;  %v102_v12 = vld [vmem:[#allocation3 + $0x1c8] sm:$0xff] }
  0x27   :  { %396 = vmatprep.subr.mxu1 %v116_v49  ;;  %326 = vmatpush1.msra.mxu0 %v51_v50  ;;  %v166_v13 = vld [vmem:[#allocation3 + $0x3c8] sm:$0xff]  ;;  %v101_v14 = vld [vmem:[#allocation3 + $0x1c0] sm:$0xff]  ;;  %v100_v16 = vld [vmem:[#allocation3 + $0x1b8] sm:$0xff] }
  0x28   :  { %397 = vmatpush1.msra.mxu1 %v115_v51  ;;  %327 = vmatprep.subr.mxu0 %v50_v52  ;;  %v165_v15 = vld [vmem:[#allocation3 + $0x3c0] sm:$0xff]  ;;  %v164_v17 = vld [vmem:[#allocation3 + $0x3b8] sm:$0xff]  ;;  %v99_v18 = vld [vmem:[#allocation3 + $0x1b0] sm:$0xff] }
  0x29   :  { %398 = vmatprep.subr.mxu1 %v114_v53  ;;  %328 = vmatpush1.msra.mxu0 %v49_v54  ;;  %v163_v19 = vld [vmem:[#allocation3 + $0x3b0] sm:$0xff]  ;;  %v98_v20 = vld [vmem:[#allocation3 + $0x1a8] sm:$0xff]  ;;  %v97_v22 = vld [vmem:[#allocation3 + $0x1a0] sm:$0xff] }
  0x2a   :  { %399 = vmatpush1.msra.mxu1 %v113_v55  ;;  %329 = vmatprep.subr.mxu0 %v48_v56  ;;  %v162_v21 = vld [vmem:[#allocation3 + $0x3a8] sm:$0xff]  ;;  %v161_v23 = vld [vmem:[#allocation3 + $0x3a0] sm:$0xff]  ;;  %v96_v24 = vld [vmem:[#allocation3 + $0x198] sm:$0xff] }
  0x2b   :  { %400 = vmatprep.subr.mxu1 %v112_v57  ;;  %330 = vmatpush1.msra.mxu0 %v47_v58  ;;  %v160_v25 = vld [vmem:[#allocation3 + $0x398] sm:$0xff]  ;;  %v95_v26 = vld [vmem:[#allocation3 + $0x190] sm:$0xff]  ;;  %v94_v28 = vld [vmem:[#allocation3 + $0x188] sm:$0xff] }
  0x2c   :  { %401 = vmatpush1.msra.mxu1 %v111_v59  ;;  %331 = vmatprep.subr.mxu0 %v46_v60  ;;  %v159_v27 = vld [vmem:[#allocation3 + $0x390] sm:$0xff]  ;;  %v158_v29 = vld [vmem:[#allocation3 + $0x388] sm:$0xff]  ;;  %v93_v30 = vld [vmem:[#allocation3 + $0x180] sm:$0xff] }
  0x2d   :  { %402 = vmatprep.subr.mxu1 %v110_v61  ;;  %332 = vmatpush1.msra.mxu0 %v45_v62  ;;  %v157_v31 = vld [vmem:[#allocation3 + $0x380] sm:$0xff]  ;;  %v92_v32 = vld [vmem:[#allocation3 + $0x178] sm:$0xff]  ;;  %v91_v34 = vld [vmem:[#allocation3 + $0x170] sm:$0xff] }
  0x2e   :  { %403 = vmatpush1.msra.mxu1 %v109_v63  ;;  %333 = vmatprep.subr.mxu0 %v108_v0  ;;  %v156_v33 = vld [vmem:[#allocation3 + $0x378] sm:$0xff]  ;;  %v155_v35 = vld [vmem:[#allocation3 + $0x370] sm:$0xff]  ;;  %v90_v36 = vld [vmem:[#allocation3 + $0x168] sm:$0xff] }
  0x2f   :  { %404 = vmatprep.subr.mxu1 %v172_v1  ;;  %334 = vmatpush2.msra.mxu0 %v107_v2  ;;  %v154_v37 = vld [vmem:[#allocation3 + $0x368] sm:$0xff]  ;;  %v89_v38 = vld [vmem:[#allocation3 + $0x160] sm:$0xff]  ;;  %v88_v40 = vld [vmem:[#allocation3 + $0x158] sm:$0xff] }
  0x30   :  { %405 = vmatpush2.msra.mxu1 %v171_v3  ;;  %335 = vmatprep.subr.mxu0 %v106_v4  ;;  %v153_v39 = vld [vmem:[#allocation3 + $0x360] sm:$0xff]  ;;  %v152_v41 = vld [vmem:[#allocation3 + $0x358] sm:$0xff]  ;;  %v87_v42 = vld [vmem:[#allocation3 + $0x150] sm:$0xff] }
  0x31   :  { %406 = vmatprep.subr.mxu1 %v170_v5  ;;  %336 = vmatpush2.msra.mxu0 %v105_v6  ;;  %v151_v43 = vld [vmem:[#allocation3 + $0x350] sm:$0xff]  ;;  %v86_v44 = vld [vmem:[#allocation3 + $0x148] sm:$0xff]  ;;  %v85_v46 = vld [vmem:[#allocation3 + $0x140] sm:$0xff] }
  0x32   :  { %407 = vmatpush2.msra.mxu1 %v169_v7  ;;  %337 = vmatprep.subr.mxu0 %v104_v8  ;;  %v150_v45 = vld [vmem:[#allocation3 + $0x348] sm:$0xff]  ;;  %v149_v47 = vld [vmem:[#allocation3 + $0x340] sm:$0xff]  ;;  %v84_v48 = vld [vmem:[#allocation3 + $0x138] sm:$0xff] }
  0x33   :  { %408 = vmatprep.subr.mxu1 %v168_v9  ;;  %338 = vmatpush2.msra.mxu0 %v103_v10  ;;  %v148_v49 = vld [vmem:[#allocation3 + $0x338] sm:$0xff]  ;;  %v83_v50 = vld [vmem:[#allocation3 + $0x130] sm:$0xff]  ;;  %v82_v52 = vld [vmem:[#allocation3 + $0x128] sm:$0xff] }
  0x34   :  { %409 = vmatpush2.msra.mxu1 %v167_v11  ;;  %339 = vmatprep.subr.mxu0 %v102_v12  ;;  %v147_v51 = vld [vmem:[#allocation3 + $0x330] sm:$0xff]  ;;  %v146_v53 = vld [vmem:[#allocation3 + $0x328] sm:$0xff]  ;;  %v81_v54 = vld [vmem:[#allocation3 + $0x120] sm:$0xff] }
  0x35   :  { %410 = vmatprep.subr.mxu1 %v166_v13  ;;  %340 = vmatpush2.msra.mxu0 %v101_v14  ;;  %v145_v55 = vld [vmem:[#allocation3 + $0x320] sm:$0xff]  ;;  %v80_v56 = vld [vmem:[#allocation3 + $0x118] sm:$0xff]  ;;  %v79_v58 = vld [vmem:[#allocation3 + $0x110] sm:$0xff] }
  0x36   :  { %411 = vmatpush2.msra.mxu1 %v165_v15  ;;  %341 = vmatprep.subr.mxu0 %v100_v16  ;;  %v144_v57 = vld [vmem:[#allocation3 + $0x318] sm:$0xff]  ;;  %v143_v59 = vld [vmem:[#allocation3 + $0x310] sm:$0xff]  ;;  %v78_v60 = vld [vmem:[#allocation3 + $0x108] sm:$0xff] }
  0x37   :  { %412 = vmatprep.subr.mxu1 %v164_v17  ;;  %342 = vmatpush2.msra.mxu0 %v99_v18  ;;  %v142_v61 = vld [vmem:[#allocation3 + $0x308] sm:$0xff]  ;;  %v77_v62 = vld [vmem:[#allocation3 + $0x100] sm:$0xff]  ;;  %v37_v2 = vld [vmem:[%s1696_s0] sm:$0x3f] }
  0x38   :  { %413 = vmatpush2.msra.mxu1 %v163_v19  ;;  %343 = vmatprep.subr.mxu0 %v98_v20  ;;  %v38_v63 = vld [vmem:[%s1696_s0 + $0x8] sm:$0x3f]  ;;  %v40_v1 = vld [vmem:[%s1696_s0 + $0x18] sm:$0x3f]  ;;  %v39_v3 = vld [vmem:[%s1696_s0 + $0x10] sm:$0x3f] }
  0x39   :  { %414 = vmatprep.subr.mxu1 %v162_v21  ;;  %344 = vmatpush2.msra.mxu0 %v97_v22  ;;  %v141_v0 = vld [vmem:[#allocation3 + $0x300] sm:$0xff]  ;;  %v204_v4 = vld [vmem:[#allocation3 + $0x4f8] sm:$0xff]  ;;  %v203_v6 = vld [vmem:[#allocation3 + $0x4f0] sm:$0xff] }
  0x3a   :  { %415 = vmatpush2.msra.mxu1 %v161_v23  ;;  %345 = vmatprep.subr.mxu0 %v96_v24  ;;  %v268_v5 = vld [vmem:[#allocation3 + $0x6f8] sm:$0xff]  ;;  %v267_v7 = vld [vmem:[#allocation3 + $0x6f0] sm:$0xff]  ;;  %v202_v8 = vld [vmem:[#allocation3 + $0x4e8] sm:$0xff] }
  0x3b   :  { %416 = vmatprep.subr.mxu1 %v160_v25  ;;  %346 = vmatpush2.msra.mxu0 %v95_v26  ;;  %v266_v9 = vld [vmem:[#allocation3 + $0x6e8] sm:$0xff]  ;;  %v201_v10 = vld [vmem:[#allocation3 + $0x4e0] sm:$0xff]  ;;  %v200_v12 = vld [vmem:[#allocation3 + $0x4d8] sm:$0xff] }
  0x3c   :  { %417 = vmatpush2.msra.mxu1 %v159_v27  ;;  %347 = vmatprep.subr.mxu0 %v94_v28  ;;  %v265_v11 = vld [vmem:[#allocation3 + $0x6e0] sm:$0xff]  ;;  %v264_v13 = vld [vmem:[#allocation3 + $0x6d8] sm:$0xff]  ;;  %v199_v14 = vld [vmem:[#allocation3 + $0x4d0] sm:$0xff] }
  0x3d   :  { %418 = vmatprep.subr.mxu1 %v158_v29  ;;  %348 = vmatpush2.msra.mxu0 %v93_v30  ;;  %v263_v15 = vld [vmem:[#allocation3 + $0x6d0] sm:$0xff]  ;;  %v198_v16 = vld [vmem:[#allocation3 + $0x4c8] sm:$0xff]  ;;  %v197_v18 = vld [vmem:[#allocation3 + $0x4c0] sm:$0xff] }
  0x3e   :  { %419 = vmatpush2.msra.mxu1 %v157_v31  ;;  %349 = vmatprep.subr.mxu0 %v92_v32  ;;  %v262_v17 = vld [vmem:[#allocation3 + $0x6c8] sm:$0xff]  ;;  %v261_v19 = vld [vmem:[#allocation3 + $0x6c0] sm:$0xff]  ;;  %v196_v20 = vld [vmem:[#allocation3 + $0x4b8] sm:$0xff] }
  0x3f   :  { %420 = vmatprep.subr.mxu1 %v156_v33  ;;  %350 = vmatpush2.msra.mxu0 %v91_v34  ;;  %v260_v21 = vld [vmem:[#allocation3 + $0x6b8] sm:$0xff]  ;;  %v195_v22 = vld [vmem:[#allocation3 + $0x4b0] sm:$0xff]  ;;  %v194_v24 = vld [vmem:[#allocation3 + $0x4a8] sm:$0xff] }
  0x40   :  { %421 = vmatpush2.msra.mxu1 %v155_v35  ;;  %351 = vmatprep.subr.mxu0 %v90_v36  ;;  %v259_v23 = vld [vmem:[#allocation3 + $0x6b0] sm:$0xff]  ;;  %v258_v25 = vld [vmem:[#allocation3 + $0x6a8] sm:$0xff]  ;;  %v193_v26 = vld [vmem:[#allocation3 + $0x4a0] sm:$0xff] }
  0x41   :  { %422 = vmatprep.subr.mxu1 %v154_v37  ;;  %352 = vmatpush2.msra.mxu0 %v89_v38  ;;  %v257_v27 = vld [vmem:[#allocation3 + $0x6a0] sm:$0xff]  ;;  %v192_v28 = vld [vmem:[#allocation3 + $0x498] sm:$0xff]  ;;  %v191_v30 = vld [vmem:[#allocation3 + $0x490] sm:$0xff] }
  0x42   :  { %423 = vmatpush2.msra.mxu1 %v153_v39  ;;  %353 = vmatprep.subr.mxu0 %v88_v40  ;;  %v256_v29 = vld [vmem:[#allocation3 + $0x698] sm:$0xff]  ;;  %v255_v31 = vld [vmem:[#allocation3 + $0x690] sm:$0xff]  ;;  %v190_v32 = vld [vmem:[#allocation3 + $0x488] sm:$0xff] }
  0x43   :  { %424 = vmatprep.subr.mxu1 %v152_v41  ;;  %354 = vmatpush2.msra.mxu0 %v87_v42  ;;  %v254_v33 = vld [vmem:[#allocation3 + $0x688] sm:$0xff]  ;;  %v189_v34 = vld [vmem:[#allocation3 + $0x480] sm:$0xff]  ;;  %v188_v36 = vld [vmem:[#allocation3 + $0x478] sm:$0xff] }
  0x44   :  { %425 = vmatpush2.msra.mxu1 %v151_v43  ;;  %355 = vmatprep.subr.mxu0 %v86_v44  ;;  %v253_v35 = vld [vmem:[#allocation3 + $0x680] sm:$0xff]  ;;  %v252_v37 = vld [vmem:[#allocation3 + $0x678] sm:$0xff]  ;;  %v187_v38 = vld [vmem:[#allocation3 + $0x470] sm:$0xff] }
  0x45   :  { %426 = vmatprep.subr.mxu1 %v150_v45  ;;  %356 = vmatpush2.msra.mxu0 %v85_v46  ;;  %v251_v39 = vld [vmem:[#allocation3 + $0x670] sm:$0xff]  ;;  %v186_v40 = vld [vmem:[#allocation3 + $0x468] sm:$0xff]  ;;  %v185_v42 = vld [vmem:[#allocation3 + $0x460] sm:$0xff] }
  0x46   :  { %427 = vmatpush2.msra.mxu1 %v149_v47  ;;  %357 = vmatprep.subr.mxu0 %v84_v48  ;;  %v250_v41 = vld [vmem:[#allocation3 + $0x668] sm:$0xff]  ;;  %v249_v43 = vld [vmem:[#allocation3 + $0x660] sm:$0xff]  ;;  %v184_v44 = vld [vmem:[#allocation3 + $0x458] sm:$0xff] }
  0x47   :  { %428 = vmatprep.subr.mxu1 %v148_v49  ;;  %358 = vmatpush2.msra.mxu0 %v83_v50  ;;  %v248_v45 = vld [vmem:[#allocation3 + $0x658] sm:$0xff]  ;;  %v183_v46 = vld [vmem:[#allocation3 + $0x450] sm:$0xff]  ;;  %v182_v48 = vld [vmem:[#allocation3 + $0x448] sm:$0xff] }
  0x48   :  { %429 = vmatpush2.msra.mxu1 %v147_v51  ;;  %359 = vmatprep.subr.mxu0 %v82_v52  ;;  %v247_v47 = vld [vmem:[#allocation3 + $0x650] sm:$0xff]  ;;  %v246_v49 = vld [vmem:[#allocation3 + $0x648] sm:$0xff]  ;;  %v181_v50 = vld [vmem:[#allocation3 + $0x440] sm:$0xff] }
  0x49   :  { %430 = vmatprep.subr.mxu1 %v146_v53  ;;  %360 = vmatpush2.msra.mxu0 %v81_v54  ;;  %v245_v51 = vld [vmem:[#allocation3 + $0x640] sm:$0xff]  ;;  %v180_v52 = vld [vmem:[#allocation3 + $0x438] sm:$0xff]  ;;  %v179_v54 = vld [vmem:[#allocation3 + $0x430] sm:$0xff] }
  0x4a   :  { %431 = vmatpush2.msra.mxu1 %v145_v55  ;;  %361 = vmatprep.subr.mxu0 %v80_v56  ;;  %v244_v53 = vld [vmem:[#allocation3 + $0x638] sm:$0xff]  ;;  %v243_v55 = vld [vmem:[#allocation3 + $0x630] sm:$0xff]  ;;  %v178_v56 = vld [vmem:[#allocation3 + $0x428] sm:$0xff] }
  0x4b   :  { %432 = vmatprep.subr.mxu1 %v144_v57  ;;  %362 = vmatpush2.msra.mxu0 %v79_v58  ;;  %v242_v57 = vld [vmem:[#allocation3 + $0x628] sm:$0xff]  ;;  %v177_v58 = vld [vmem:[#allocation3 + $0x420] sm:$0xff] }
  0x4c   :  { %433 = vmatpush2.msra.mxu1 %v143_v59  ;;  %363 = vmatprep.subr.mxu0 %v78_v60  ;;  %v241_v59 = vld [vmem:[#allocation3 + $0x620] sm:$0xff]  ;;  %v176_v60 = vld [vmem:[#allocation3 + $0x418] sm:$0xff] }
  0x4d   :  { %434 = vmatprep.subr.mxu1 %v142_v61  ;;  %364 = vmatpush2.msra.mxu0 %v77_v62  ;;  %v240_v61 = vld [vmem:[#allocation3 + $0x618] sm:$0xff]  ;;  %v175_v62 = vld [vmem:[#allocation3 + $0x410] sm:$0xff] }
  0x4e   :  { %365 = vmatprep.mubr.f32.mxu0 %v38_v63  ;;  %435 = vmatpush2.msra.mxu1 %v141_v0  ;;  %v239_v63 = vld [vmem:[#allocation3 + $0x610] sm:$0xff]  ;;  %v174_v0 = vld [vmem:[#allocation3 + $0x408] sm:$0xff] }
  0x4f   :  { %436 = vmatprep.mubr.f32.mxu1 %v40_v1  ;;  %366 = vmatmul.mubr.f32.vlgmr.msra.gmra.mxu0 %v37_v2  ;;  %v238_v1 = vld [vmem:[#allocation3 + $0x608] sm:$0xff]  ;;  %v173_v2 = vld [vmem:[#allocation3 + $0x400] sm:$0xff] }
  0x50   :  { %437 = vmatmul.mubr.f32.vlgmr.msra.gmra.mxu1 %v39_v3  ;;  %443 = vmatprep.subr.mxu0 %v204_v4  ;;  %v237_v3 = vld [vmem:[#allocation3 + $0x600] sm:$0xff]  ;;  %v236_v4 = vld [vmem:[#allocation3 + $0x5f8] sm:$0xff] }
  0x51   :  { %514 = vmatprep.subr.mxu1 %v268_v5  ;;  %444 = vmatpush1.msra.mxu0 %v203_v6  ;;  %v300_v5 = vld [vmem:[#allocation3 + $0x7f8] sm:$0xff]  ;;  %v235_v6 = vld [vmem:[#allocation3 + $0x5f0] sm:$0xff] }
  0x52   :  { %515 = vmatpush1.msra.mxu1 %v267_v7  ;;  %445 = vmatprep.subr.mxu0 %v202_v8  ;;  %v299_v7 = vld [vmem:[#allocation3 + $0x7f0] sm:$0xff]  ;;  %v234_v8 = vld [vmem:[#allocation3 + $0x5e8] sm:$0xff] }
  0x53   :  { %516 = vmatprep.subr.mxu1 %v266_v9  ;;  %446 = vmatpush1.msra.mxu0 %v201_v10  ;;  %v298_v9 = vld [vmem:[#allocation3 + $0x7e8] sm:$0xff]  ;;  %v233_v10 = vld [vmem:[#allocation3 + $0x5e0] sm:$0xff] }
  0x54   :  { %517 = vmatpush1.msra.mxu1 %v265_v11  ;;  %447 = vmatprep.subr.mxu0 %v200_v12  ;;  %v297_v11 = vld [vmem:[#allocation3 + $0x7e0] sm:$0xff]  ;;  %v232_v12 = vld [vmem:[#allocation3 + $0x5d8] sm:$0xff] }
  0x55   :  { %518 = vmatprep.subr.mxu1 %v264_v13  ;;  %448 = vmatpush1.msra.mxu0 %v199_v14  ;;  %v296_v13 = vld [vmem:[#allocation3 + $0x7d8] sm:$0xff]  ;;  %v231_v14 = vld [vmem:[#allocation3 + $0x5d0] sm:$0xff] }
  0x56   :  { %519 = vmatpush1.msra.mxu1 %v263_v15  ;;  %449 = vmatprep.subr.mxu0 %v198_v16  ;;  %v295_v15 = vld [vmem:[#allocation3 + $0x7d0] sm:$0xff]  ;;  %v230_v16 = vld [vmem:[#allocation3 + $0x5c8] sm:$0xff] }
  0x57   :  { %520 = vmatprep.subr.mxu1 %v262_v17  ;;  %450 = vmatpush1.msra.mxu0 %v197_v18  ;;  %v294_v17 = vld [vmem:[#allocation3 + $0x7c8] sm:$0xff]  ;;  %v229_v18 = vld [vmem:[#allocation3 + $0x5c0] sm:$0xff] }
  0x58   :  { %521 = vmatpush1.msra.mxu1 %v261_v19  ;;  %451 = vmatprep.subr.mxu0 %v196_v20  ;;  %v293_v19 = vld [vmem:[#allocation3 + $0x7c0] sm:$0xff]  ;;  %v228_v20 = vld [vmem:[#allocation3 + $0x5b8] sm:$0xff] }
  0x59   :  { %522 = vmatprep.subr.mxu1 %v260_v21  ;;  %452 = vmatpush1.msra.mxu0 %v195_v22  ;;  %v292_v21 = vld [vmem:[#allocation3 + $0x7b8] sm:$0xff]  ;;  %v227_v22 = vld [vmem:[#allocation3 + $0x5b0] sm:$0xff] }
  0x5a   :  { %523 = vmatpush1.msra.mxu1 %v259_v23  ;;  %453 = vmatprep.subr.mxu0 %v194_v24  ;;  %v291_v23 = vld [vmem:[#allocation3 + $0x7b0] sm:$0xff]  ;;  %v226_v24 = vld [vmem:[#allocation3 + $0x5a8] sm:$0xff] }
  0x5b   :  { %524 = vmatprep.subr.mxu1 %v258_v25  ;;  %454 = vmatpush1.msra.mxu0 %v193_v26  ;;  %v290_v25 = vld [vmem:[#allocation3 + $0x7a8] sm:$0xff]  ;;  %v225_v26 = vld [vmem:[#allocation3 + $0x5a0] sm:$0xff] }
  0x5c   :  { %525 = vmatpush1.msra.mxu1 %v257_v27  ;;  %455 = vmatprep.subr.mxu0 %v192_v28  ;;  %v289_v27 = vld [vmem:[#allocation3 + $0x7a0] sm:$0xff]  ;;  %v224_v28 = vld [vmem:[#allocation3 + $0x598] sm:$0xff] }
  0x5d   :  { %526 = vmatprep.subr.mxu1 %v256_v29  ;;  %456 = vmatpush1.msra.mxu0 %v191_v30  ;;  %v288_v29 = vld [vmem:[#allocation3 + $0x798] sm:$0xff]  ;;  %v223_v30 = vld [vmem:[#allocation3 + $0x590] sm:$0xff] }
  0x5e   :  { %527 = vmatpush1.msra.mxu1 %v255_v31  ;;  %457 = vmatprep.subr.mxu0 %v190_v32  ;;  %v287_v31 = vld [vmem:[#allocation3 + $0x790] sm:$0xff]  ;;  %v222_v32 = vld [vmem:[#allocation3 + $0x588] sm:$0xff] }
  0x5f   :  { %528 = vmatprep.subr.mxu1 %v254_v33  ;;  %458 = vmatpush1.msra.mxu0 %v189_v34  ;;  %v286_v33 = vld [vmem:[#allocation3 + $0x788] sm:$0xff]  ;;  %v221_v34 = vld [vmem:[#allocation3 + $0x580] sm:$0xff] }
  0x60   :  { %529 = vmatpush1.msra.mxu1 %v253_v35  ;;  %459 = vmatprep.subr.mxu0 %v188_v36  ;;  %v285_v35 = vld [vmem:[#allocation3 + $0x780] sm:$0xff]  ;;  %v220_v36 = vld [vmem:[#allocation3 + $0x578] sm:$0xff] }
  0x61   :  { %530 = vmatprep.subr.mxu1 %v252_v37  ;;  %460 = vmatpush1.msra.mxu0 %v187_v38  ;;  %v284_v37 = vld [vmem:[#allocation3 + $0x778] sm:$0xff]  ;;  %v219_v38 = vld [vmem:[#allocation3 + $0x570] sm:$0xff] }
  0x62   :  { %531 = vmatpush1.msra.mxu1 %v251_v39  ;;  %461 = vmatprep.subr.mxu0 %v186_v40  ;;  %v283_v39 = vld [vmem:[#allocation3 + $0x770] sm:$0xff]  ;;  %v218_v40 = vld [vmem:[#allocation3 + $0x568] sm:$0xff] }
  0x63   :  { %532 = vmatprep.subr.mxu1 %v250_v41  ;;  %462 = vmatpush1.msra.mxu0 %v185_v42  ;;  %v282_v41 = vld [vmem:[#allocation3 + $0x768] sm:$0xff]  ;;  %v217_v42 = vld [vmem:[#allocation3 + $0x560] sm:$0xff] }
  0x64   :  { %533 = vmatpush1.msra.mxu1 %v249_v43  ;;  %463 = vmatprep.subr.mxu0 %v184_v44  ;;  %v281_v43 = vld [vmem:[#allocation3 + $0x760] sm:$0xff]  ;;  %v216_v44 = vld [vmem:[#allocation3 + $0x558] sm:$0xff] }
  0x65   :  { %534 = vmatprep.subr.mxu1 %v248_v45  ;;  %464 = vmatpush1.msra.mxu0 %v183_v46  ;;  %v280_v45 = vld [vmem:[#allocation3 + $0x758] sm:$0xff]  ;;  %v215_v46 = vld [vmem:[#allocation3 + $0x550] sm:$0xff] }
  0x66   :  { %535 = vmatpush1.msra.mxu1 %v247_v47  ;;  %465 = vmatprep.subr.mxu0 %v182_v48  ;;  %v279_v47 = vld [vmem:[#allocation3 + $0x750] sm:$0xff]  ;;  %v214_v48 = vld [vmem:[#allocation3 + $0x548] sm:$0xff] }
  0x67   :  { %536 = vmatprep.subr.mxu1 %v246_v49  ;;  %466 = vmatpush1.msra.mxu0 %v181_v50  ;;  %v278_v49 = vld [vmem:[#allocation3 + $0x748] sm:$0xff]  ;;  %v213_v50 = vld [vmem:[#allocation3 + $0x540] sm:$0xff] }
  0x68   :  { %537 = vmatpush1.msra.mxu1 %v245_v51  ;;  %467 = vmatprep.subr.mxu0 %v180_v52  ;;  %v277_v51 = vld [vmem:[#allocation3 + $0x740] sm:$0xff]  ;;  %v212_v52 = vld [vmem:[#allocation3 + $0x538] sm:$0xff] }
  0x69   :  { %538 = vmatprep.subr.mxu1 %v244_v53  ;;  %468 = vmatpush1.msra.mxu0 %v179_v54  ;;  %v276_v53 = vld [vmem:[#allocation3 + $0x738] sm:$0xff]  ;;  %v211_v54 = vld [vmem:[#allocation3 + $0x530] sm:$0xff] }
  0x6a   :  { %539 = vmatpush1.msra.mxu1 %v243_v55  ;;  %469 = vmatprep.subr.mxu0 %v178_v56  ;;  %v275_v55 = vld [vmem:[#allocation3 + $0x730] sm:$0xff]  ;;  %v210_v56 = vld [vmem:[#allocation3 + $0x528] sm:$0xff] }
  0x6b   :  { %540 = vmatprep.subr.mxu1 %v242_v57  ;;  %470 = vmatpush1.msra.mxu0 %v177_v58  ;;  %v274_v57 = vld [vmem:[#allocation3 + $0x728] sm:$0xff]  ;;  %v209_v58 = vld [vmem:[#allocation3 + $0x520] sm:$0xff] }
  0x6c   :  { %541 = vmatpush1.msra.mxu1 %v241_v59  ;;  %471 = vmatprep.subr.mxu0 %v176_v60  ;;  %v273_v59 = vld [vmem:[#allocation3 + $0x720] sm:$0xff]  ;;  %v208_v60 = vld [vmem:[#allocation3 + $0x518] sm:$0xff] }
  0x6d   :  { %542 = vmatprep.subr.mxu1 %v240_v61  ;;  %472 = vmatpush1.msra.mxu0 %v175_v62  ;;  %v272_v61 = vld [vmem:[#allocation3 + $0x718] sm:$0xff]  ;;  %v207_v62 = vld [vmem:[#allocation3 + $0x510] sm:$0xff] }
  0x6e   :  { %543 = vmatpush1.msra.mxu1 %v239_v63  ;;  %473 = vmatprep.subr.mxu0 %v174_v0  ;;  %v271_v63 = vld [vmem:[#allocation3 + $0x710] sm:$0xff]  ;;  %v206_v0 = vld [vmem:[#allocation3 + $0x508] sm:$0xff] }
  0x6f   :  { %544 = vmatprep.subr.mxu1 %v238_v1  ;;  %474 = vmatpush1.msra.mxu0 %v173_v2  ;;  %v270_v1 = vld [vmem:[#allocation3 + $0x708] sm:$0xff]  ;;  %v205_v2 = vld [vmem:[#allocation3 + $0x500] sm:$0xff] }
  0x70   :  { %545 = vmatpush1.msra.mxu1 %v237_v3  ;;  %475 = vmatprep.subr.mxu0 %v236_v4  ;;  %v42_v3 = vld [vmem:[%s1696_s0 + $0x28] sm:$0x3f] }
  0x71   :  { %546 = vmatprep.subr.mxu1 %v300_v5  ;;  %476 = vmatpush2.msra.mxu0 %v235_v6  ;;  %v269_v4 = vld [vmem:[#allocation3 + $0x700] sm:$0xff]  ;;  %v44_v5 = vld [vmem:[%s1696_s0 + $0x38] sm:$0x3f]  ;;  %v41_v6 = vld [vmem:[%s1696_s0 + $0x20] sm:$0x3f] }
  0x72   :  { %547 = vmatpush2.msra.mxu1 %v299_v7  ;;  %477 = vmatprep.subr.mxu0 %v234_v8  ;;  %v43_v7 = vld [vmem:[%s1696_s0 + $0x30] sm:$0x3f]  ;;  %v1291_v8 = vmov 0.0  }
  0x73   :  { %548 = vmatprep.subr.mxu1 %v298_v9  ;;  %478 = vmatpush2.msra.mxu0 %v233_v10 }
  0x74   :  { %549 = vmatpush2.msra.mxu1 %v297_v11  ;;  %479 = vmatprep.subr.mxu0 %v232_v12 }
  0x75   :  { %550 = vmatprep.subr.mxu1 %v296_v13  ;;  %480 = vmatpush2.msra.mxu0 %v231_v14 }
  0x76   :  { %551 = vmatpush2.msra.mxu1 %v295_v15  ;;  %481 = vmatprep.subr.mxu0 %v230_v16 }
  0x77   :  { %552 = vmatprep.subr.mxu1 %v294_v17  ;;  %482 = vmatpush2.msra.mxu0 %v229_v18 }
  0x78   :  { %553 = vmatpush2.msra.mxu1 %v293_v19  ;;  %483 = vmatprep.subr.mxu0 %v228_v20 }
  0x79   :  { %554 = vmatprep.subr.mxu1 %v292_v21  ;;  %484 = vmatpush2.msra.mxu0 %v227_v22 }
  0x7a   :  { %555 = vmatpush2.msra.mxu1 %v291_v23  ;;  %485 = vmatprep.subr.mxu0 %v226_v24 }
  0x7b   :  { %556 = vmatprep.subr.mxu1 %v290_v25  ;;  %486 = vmatpush2.msra.mxu0 %v225_v26  ;;  %v1293_v26 = vmov 0  }
  0x7c   :  { %557 = vmatpush2.msra.mxu1 %v289_v27  ;;  %487 = vmatprep.subr.mxu0 %v224_v28  ;;  %v591_v27 = vld [vmem:[%s1698_s2] sm:$0x3f] }
  0x7d   :  { %558 = vmatprep.subr.mxu1 %v288_v29  ;;  %488 = vmatpush2.msra.mxu0 %v223_v30  ;;  %v786_v29 = vld [vmem:[%s1700_s4 + $0xf8] sm:$0xff] }
  0x7e   :  { %559 = vmatpush2.msra.mxu1 %v287_v31  ;;  %489 = vmatprep.subr.mxu0 %v222_v32  ;;  %v770_v30 = vld [vmem:[%s1700_s4 + $0x78] sm:$0xff]  ;;  %v785_v31 = vld [vmem:[%s1700_s4 + $0xf0] sm:$0xff] }
  0x7f   :  { %560 = vmatprep.subr.mxu1 %v286_v33  ;;  %490 = vmatpush2.msra.mxu0 %v221_v34  ;;  %v769_v32 = vld [vmem:[%s1700_s4 + $0x70] sm:$0xff]  ;;  %v818_v33 = vld [vmem:[%s1700_s4 + $0x1f8] sm:$0xff]  ;;  %v784_v34 = vld [vmem:[%s1700_s4 + $0xe8] sm:$0xff] }
  0x80   :  { %561 = vmatpush2.msra.mxu1 %v285_v35  ;;  %491 = vmatprep.subr.mxu0 %v220_v36  ;;  %v802_v35 = vld [vmem:[%s1700_s4 + $0x178] sm:$0xff]  ;;  %v768_v36 = vld [vmem:[%s1700_s4 + $0x68] sm:$0xff] }
  0x81   :  { %562 = vmatprep.subr.mxu1 %v284_v37  ;;  %492 = vmatpush2.msra.mxu0 %v219_v38  ;;  %v817_v37 = vld [vmem:[%s1700_s4 + $0x1f0] sm:$0xff]  ;;  %v783_v38 = vld [vmem:[%s1700_s4 + $0xe0] sm:$0xff] }
  0x82   :  { %563 = vmatpush2.msra.mxu1 %v283_v39  ;;  %493 = vmatprep.subr.mxu0 %v218_v40  ;;  %v801_v39 = vld [vmem:[%s1700_s4 + $0x170] sm:$0xff]  ;;  %v767_v40 = vld [vmem:[%s1700_s4 + $0x60] sm:$0xff] }
  0x83   :  { %564 = vmatprep.subr.mxu1 %v282_v41  ;;  %494 = vmatpush2.msra.mxu0 %v217_v42  ;;  %v816_v41 = vld [vmem:[%s1700_s4 + $0x1e8] sm:$0xff] }
  0x84   :  { %565 = vmatpush2.msra.mxu1 %v281_v43  ;;  %495 = vmatprep.subr.mxu0 %v216_v44  ;;  %v782_v43 = vld [vmem:[%s1700_s4 + $0xd8] sm:$0xff]  ;;  %v800_v44 = vld [vmem:[%s1700_s4 + $0x168] sm:$0xff] }
  0x85   :  { %566 = vmatprep.subr.mxu1 %v280_v45  ;;  %496 = vmatpush2.msra.mxu0 %v215_v46  ;;  %v766_v45 = vld [vmem:[%s1700_s4 + $0x58] sm:$0xff]  ;;  %v815_v46 = vld [vmem:[%s1700_s4 + $0x1e0] sm:$0xff] }
  0x86   :  { %567 = vmatpush2.msra.mxu1 %v279_v47  ;;  %497 = vmatprep.subr.mxu0 %v214_v48  ;;  %v781_v48 = vld [vmem:[%s1700_s4 + $0xd0] sm:$0xff] }
  0x87   :  { %568 = vmatprep.subr.mxu1 %v278_v49  ;;  %498 = vmatpush2.msra.mxu0 %v213_v50  ;;  %v799_v49 = vld [vmem:[%s1700_s4 + $0x160] sm:$0xff]  ;;  %v765_v50 = vld [vmem:[%s1700_s4 + $0x50] sm:$0xff] }
  0x88   :  { %569 = vmatpush2.msra.mxu1 %v277_v51  ;;  %499 = vmatprep.subr.mxu0 %v212_v52  ;;  %v814_v51 = vld [vmem:[%s1700_s4 + $0x1d8] sm:$0xff]  ;;  %v780_v52 = vld [vmem:[%s1700_s4 + $0xc8] sm:$0xff] }
  0x89   :  { %570 = vmatprep.subr.mxu1 %v276_v53  ;;  %500 = vmatpush2.msra.mxu0 %v211_v54  ;;  %v798_v53 = vld [vmem:[%s1700_s4 + $0x158] sm:$0xff]  ;;  %v764_v54 = vld [vmem:[%s1700_s4 + $0x48] sm:$0xff] }
  0x8a   :  { %571 = vmatpush2.msra.mxu1 %v275_v55  ;;  %501 = vmatprep.subr.mxu0 %v210_v56  ;;  %v813_v55 = vld [vmem:[%s1700_s4 + $0x1d0] sm:$0xff]  ;;  %v779_v56 = vld [vmem:[%s1700_s4 + $0xc0] sm:$0xff] }
  0x8b   :  { %572 = vmatprep.subr.mxu1 %v274_v57  ;;  %502 = vmatpush2.msra.mxu0 %v209_v58  ;;  %v797_v57 = vld [vmem:[%s1700_s4 + $0x150] sm:$0xff]  ;;  %v763_v58 = vld [vmem:[%s1700_s4 + $0x40] sm:$0xff] }
  0x8c   :  { %573 = vmatpush2.msra.mxu1 %v273_v59  ;;  %503 = vmatprep.subr.mxu0 %v208_v60  ;;  %v812_v59 = vld [vmem:[%s1700_s4 + $0x1c8] sm:$0xff]  ;;  %v778_v60 = vld [vmem:[%s1700_s4 + $0xb8] sm:$0xff] }
  0x8d   :  { %574 = vmatprep.subr.mxu1 %v272_v61  ;;  %504 = vmatpush2.msra.mxu0 %v207_v62  ;;  %v796_v61 = vld [vmem:[%s1700_s4 + $0x148] sm:$0xff]  ;;  %v762_v62 = vld [vmem:[%s1700_s4 + $0x38] sm:$0xff] }
  0x8e   :  { %575 = vmatpush2.msra.mxu1 %v271_v63  ;;  %505 = vmatprep.subr.mxu0 %v206_v0  ;;  %v811_v63 = vld [vmem:[%s1700_s4 + $0x1c0] sm:$0xff]  ;;  %v777_v0 = vld [vmem:[%s1700_s4 + $0xb0] sm:$0xff] }
  0x8f   :  { %576 = vmatprep.subr.mxu1 %v270_v1  ;;  %506 = vmatpush2.msra.mxu0 %v205_v2  ;;  %v795_v1 = vld [vmem:[%s1700_s4 + $0x140] sm:$0xff]  ;;  %v761_v2 = vld [vmem:[%s1700_s4 + $0x30] sm:$0xff] }
  0x90   :  { %507 = vmatprep.mubr.f32.mxu0 %v42_v3  ;;  %577 = vmatpush2.msra.mxu1 %v269_v4  ;;  %v810_v3 = vld [vmem:[%s1700_s4 + $0x1b8] sm:$0xff]  ;;  %v776_v4 = vld [vmem:[%s1700_s4 + $0xa8] sm:$0xff] }
  0x91   :  { %578 = vmatprep.mubr.f32.mxu1 %v44_v5  ;;  %508 = vmatmul.mubr.f32.vlgmr.msra.gmra.mxu0 %v41_v6  ;;  %v794_v5 = vld [vmem:[%s1700_s4 + $0x138] sm:$0xff]  ;;  %v760_v6 = vld [vmem:[%s1700_s4 + $0x28] sm:$0xff] }
  0x92   :  { %579 = vmatmul.mubr.f32.vlgmr.msra.gmra.mxu1 %v43_v7  ;;  %1250 = vmatprep.subr.mxu0 %v1291_v8  ;;  %v809_v7 = vld [vmem:[%s1700_s4 + $0x1b0] sm:$0xff] }
  0x93   :  { %1252 = vmatprep.mubr.msk.f32.mxu0 %vm1292_vm1, %v1291_v8  ;;  %1263 = vset.pattern.permute.xlu0 %v1293_v26  ;;  %v775_v8 = vld [vmem:[%s1700_s4 + $0xa0] sm:$0xff] }
  0x94   :  { %1264 = vset.pattern.permute.xlu1 %v1293_v26  ;;  %1145 = vmatprep.subr.mxu1 %v786_v29  ;;  %v771_v26 = vld [vmem:[%s1700_s4 + $0x80] sm:$0xff]  ;;  %v804_v29 = vld [vmem:[%s1700_s4 + $0x188] sm:$0xff] }
  0x95   :  { %1146 = vmatpush3.msra.mxu1 %v770_v30  ;;  %v788_v30 = vld [vmem:[%s1700_s4 + $0x108] sm:$0xff] }
  0x96   :  { %1147 = vmatprep.subr.mxu1 %v785_v31  ;;  %v850_v31 = vld [vmem:[%s1700_s4 + $0x2f8] sm:$0xff] }
  0x97   :  { %1148 = vmatpush3.msra.mxu1 %v769_v32  ;;  %v803_v32 = vld [vmem:[%s1700_s4 + $0x180] sm:$0xff] }
  0x98   :  { %1149 = vmatprep.subr.mxu1 %v784_v34  ;;  %v1102_v34 = vld [vmem:[%s1699_s3] sm:$0x3] }
  0x99   :  { %1150 = vmatpush3.msra.mxu1 %v768_v36  ;;  %1105 = vperm.xlu1 %1264, %v1102_v34   ;;  %v838_v34 = vld [vmem:[%s1700_s4 + $0x298] sm:$0xff] }
  0x9a   :  { %1151 = vmatprep.subr.mxu1 %v783_v38 }
  0x9b   :  { %1152 = vmatpush3.msra.mxu1 %v767_v40 }
  0x9c   :  { %1153 = vmatprep.subr.mxu1 %v782_v43 }
  0x9d   :  { %1154 = vmatpush3.msra.mxu1 %v766_v45 }
  0x9e   :  { %1155 = vmatprep.subr.mxu1 %v781_v48 }
  0x9f   :  { %1156 = vmatpush3.msra.mxu1 %v765_v50 }
  0xa0   :  { %1157 = vmatprep.subr.mxu1 %v780_v52 }
  0xa1   :  { %1158 = vmatpush3.msra.mxu1 %v764_v54 }
  0xa2   :  { %1159 = vmatprep.subr.mxu1 %v779_v56 }
  0xa3   :  { %1160 = vmatpush3.msra.mxu1 %v763_v58 }
  0xa4   :  { %1161 = vmatprep.subr.mxu1 %v778_v60  ;;  %v1295_v60 = vmov 1983009808  }
  0xa5   :  { %1162 = vmatpush3.msra.mxu1 %v762_v62 }
  0xa6   :  { %1163 = vmatprep.subr.mxu1 %v777_v0 }
  0xa7   :  { %1164 = vmatpush3.msra.mxu1 %v761_v2 }
  0xa8   :  { %1165 = vmatprep.subr.mxu1 %v776_v4 }
  0xa9   :  { %1166 = vmatpush3.msra.mxu1 %v760_v6 }
  0xaa   :  { %1167 = vmatprep.subr.mxu1 %v775_v8 }
 0x10f   :  { %v367_v9 = vpop.f32.mrf.mxu0 }
 0x110   :  { %v438_v10 = vpop.f32.mrf.mxu1 }
 0x111   :  { %v369_v11 = vpop.f32.mrf.mxu0  ;;  %v439_v13 = vadd.f32 %v438_v10, %v367_v9  ;;  %v793_v9 = vld [vmem:[%s1700_s4 + $0x130] sm:$0xff]  ;;  %v759_v10 = vld [vmem:[%s1700_s4 + $0x20] sm:$0xff] }
 0x112   :  { %v440_v12 = vpop.f32.mrf.mxu1  ;;  %1168 = vmatpush3.msra.mxu1 %v759_v10 }
 0x113   :  { %v441_v16 = vadd.f32 %v440_v12, %v369_v11  ;;  %v808_v11 = vld [vmem:[%s1700_s4 + $0x1a8] sm:$0xff]  ;;  %v774_v12 = vld [vmem:[%s1700_s4 + $0x98] sm:$0xff] }
 0x114   :  { %1169 = vmatprep.subr.mxu1 %v774_v12  ;;  %v848_v12 = vld [vmem:[%s1700_s4 + $0x2e8] sm:$0xff] }
 0x151   :  { %v509_v14 = vpop.f32.mrf.mxu0 }
 0x152   :  { %v580_v15 = vpop.f32.mrf.mxu1  ;;  %v510_v17 = vadd.f32 %v509_v14, %v439_v13  ;;  %v792_v13 = vld [vmem:[%s1700_s4 + $0x128] sm:$0xff]  ;;  %v758_v14 = vld [vmem:[%s1700_s4 + $0x18] sm:$0xff] }
 0x153   :  { %v511_v18 = vpop.f32.mrf.mxu0  ;;  %1170 = vmatpush3.msra.mxu1 %v758_v14  ;;  %v847_v14 = vld [vmem:[%s1700_s4 + $0x2e0] sm:$0xff] }
 0x154   :  { %v1358_v19 = vadd.f32 %v580_v15, %v510_v17  ;;  %v512_v20 = vadd.f32 %v511_v18, %v441_v16  ;;  %v582_v21 = vpop.f32.mrf.mxu1  ;;  %v807_v15 = vld [vmem:[%s1700_s4 + $0x1a0] sm:$0xff]  ;;  %v773_v16 = vld [vmem:[%s1700_s4 + $0x90] sm:$0xff] }
 0x155   :  { %v791_v17 = vld [vmem:[%s1700_s4 + $0x120] sm:$0xff]  ;;  %v757_v18 = vld [vmem:[%s1700_s4 + $0x10] sm:$0xff]  ;;  %1171 = vmatprep.subr.mxu1 %v773_v16  ;;  %v846_v16 = vld [vmem:[%s1700_s4 + $0x2d8] sm:$0xff] }
 0x156   :  { %v1360_v22 = vadd.f32 %v582_v21, %v512_v20  ;;  %v586_v23 = vsel %vm585_vm0, %v1358_v19, 0.0  ;;  %v806_v20 = vld [vmem:[%s1700_s4 + $0x198] sm:$0xff]  ;;  %v772_v21 = vld [vmem:[%s1700_s4 + $0x88] sm:$0xff]  ;;  %1172 = vmatpush3.msra.mxu1 %v757_v18  ;;  %v669_v38 = vmul.f32 1.2, %v1358_v19  ;;  %v845_v18 = vld [vmem:[%s1700_s4 + $0x2d0] sm:$0xff] }
 0x157   :  { %1173 = vmatprep.subr.mxu1 %v772_v21  ;;  %v844_v21 = vld [vmem:[%s1700_s4 + $0x2c8] sm:$0xff] }
 0x158   :  { %v587_v24 = vsel %vm585_vm0, %v1360_v22, 0.0 }
 0x159   :  { %v588_v25 = vadd.f32 %v587_v24, %v586_v23  ;;  %v790_v23 = vld [vmem:[%s1700_s4 + $0x118] sm:$0xff]  ;;  %v756_v24 = vld [vmem:[%s1700_s4 + $0x8] sm:$0xff] }
 0x15a   :  { %1174 = vmatpush3.msra.mxu1 %v756_v24  ;;  %v843_v24 = vld [vmem:[%s1700_s4 + $0x2c0] sm:$0xff] }
 0x15b   :  { %589 = vadd.xlane.f32.xlu0 %v588_v25  ;;  %v805_v25 = vld [vmem:[%s1700_s4 + $0x190] sm:$0xff]  ;;  %1175 = vmatprep.subr.mxu1 %v771_v26  ;;  %v842_v26 = vld [vmem:[%s1700_s4 + $0x2b8] sm:$0xff] }
 0x1e4   :  { %v590_v28 = vpop.xlane.xlu0 %589 }
 0x1e5   :  { %1251 = vmatpush3.msk.msra.mxu0 %vm585_vm0, %v590_v28  ;;  %v755_v28 = vld [vmem:[%s1700_s4] sm:$0xff] }
 0x1e6   :  { %1253 = vmatmul.mubr.msk.f32.vlgmr.msra.gmra.mxu0 %vm592_vm2, %v591_v27  ;;  %1180 = vmatprep.subr.mxu0 %v818_v33  ;;  %v789_v27 = vld [vmem:[%s1700_s4 + $0x110] sm:$0xff]  ;;  %v787_v33 = vld [vmem:[%s1700_s4 + $0x100] sm:$0xff] }
 0x1e7   :  { %1181 = vmatpush3.msra.mxu0 %v802_v35  ;;  %1176 = vmatpush3.msra.mxu1 %v755_v28  ;;  %v1294_v35 = vmov 1966171168   ;;  %v841_v28 = vld [vmem:[%s1700_s4 + $0x2b0] sm:$0xff] }
 0x1e8   :  { %1182 = vmatprep.subr.mxu0 %v817_v37  ;;  %1215 = vmatprep.subr.mxu1 %v850_v31  ;;  %v686_v36 = vunpack.c.l.s4 %v1294_v35  ;;  %v688_v37 = vlaneseq  ;;  %v824_v31 = vld [vmem:[%s1700_s4 + $0x228] sm:$0xff]  ;;  %v822_v35 = vld [vmem:[%s1700_s4 + $0x218] sm:$0xff] }
 0x1e9   :  { %1183 = vmatpush3.msra.mxu0 %v801_v39  ;;  %v670_v39 = vmul.f32 1.2, %v1360_v22 }
 0x1ea   :  { %1184 = vmatprep.subr.mxu0 %v816_v41  ;;  %v687_v41 = vunpack.c.0.s8 %v686_v36  ;;  %vm1567_vm3 = vcmp.lt.s32.totalorder %v688_v37, 256  ;;  %v837_v36 = vld [vmem:[%s1700_s4 + $0x290] sm:$0xff] }
 0x1eb   :  { %1185 = vmatpush3.msra.mxu0 %v800_v44 }
 0x1ec   :  { %1186 = vmatprep.subr.mxu0 %v815_v46 }
 0x1ed   :  { %1187 = vmatpush3.msra.mxu0 %v799_v49 }
 0x1ee   :  { %1188 = vmatprep.subr.mxu0 %v814_v51 }
 0x1ef   :  { %1189 = vmatpush3.msra.mxu0 %v798_v53 }
 0x1f0   :  { %1190 = vmatprep.subr.mxu0 %v813_v55 }
 0x1f1   :  { %1191 = vmatpush3.msra.mxu0 %v797_v57 }
 0x1f2   :  { %1192 = vmatprep.subr.mxu0 %v812_v59 }
 0x1f3   :  { %1193 = vmatpush3.msra.mxu0 %v796_v61  ;;  %v863_v61 = vunpack.c.l.s4 %v1295_v60 }
 0x1f4   :  { %1194 = vmatprep.subr.mxu0 %v811_v63 }
 0x1f5   :  { %1195 = vmatpush3.msra.mxu0 %v795_v1  ;;  %v864_v63 = vunpack.c.0.s8 %v863_v61  ;;  %v1142_v61 = vld [vmem:[%s1701_s5 + $0x3] ss:$0 sm:$0xff] }
 0x1f6   :  { %1196 = vmatprep.subr.mxu0 %v810_v3 }
 0x1f7   :  { %1197 = vmatpush3.msra.mxu0 %v794_v5 }
 0x1f8   :  { %1198 = vmatprep.subr.mxu0 %v809_v7  ;;  %v834_v7 = vld [vmem:[%s1700_s4 + $0x278] sm:$0xff] }
 0x1f9   :  { %1199 = vmatpush3.msra.mxu0 %v793_v9  ;;  %v849_v9 = vld [vmem:[%s1700_s4 + $0x2f0] sm:$0xff] }
 0x1fa   :  { %1200 = vmatprep.subr.mxu0 %v808_v11  ;;  %v833_v11 = vld [vmem:[%s1700_s4 + $0x270] sm:$0xff] }
 0x1fb   :  { %1201 = vmatpush3.msra.mxu0 %v792_v13  ;;  %v832_v13 = vld [vmem:[%s1700_s4 + $0x268] sm:$0xff] }
 0x1fc   :  { %1202 = vmatprep.subr.mxu0 %v807_v15  ;;  %v831_v15 = vld [vmem:[%s1700_s4 + $0x260] sm:$0xff] }
 0x1fd   :  { %1203 = vmatpush3.msra.mxu0 %v791_v17  ;;  %v830_v17 = vld [vmem:[%s1700_s4 + $0x258] sm:$0xff] }
 0x1fe   :  { %1204 = vmatprep.subr.mxu0 %v806_v20  ;;  %v829_v20 = vld [vmem:[%s1700_s4 + $0x250] sm:$0xff] }
 0x1ff   :  { %1205 = vmatpush3.msra.mxu0 %v790_v23  ;;  %v828_v23 = vld [vmem:[%s1700_s4 + $0x248] sm:$0xff] }
 0x200   :  { %1206 = vmatprep.subr.mxu0 %v805_v25  ;;  %v827_v25 = vld [vmem:[%s1700_s4 + $0x240] sm:$0xff] }
 0x201   :  { %1207 = vmatpush3.msra.mxu0 %v789_v27  ;;  %v826_v27 = vld [vmem:[%s1700_s4 + $0x238] sm:$0xff] }
 0x202   :  { %1208 = vmatprep.subr.mxu0 %v804_v29  ;;  %v825_v29 = vld [vmem:[%s1700_s4 + $0x230] sm:$0xff] }
 0x203   :  { %1209 = vmatpush3.msra.mxu0 %v788_v30  ;;  %v840_v30 = vld [vmem:[%s1700_s4 + $0x2a8] sm:$0xff] }
 0x204   :  { %1210 = vmatprep.subr.mxu0 %v803_v32  ;;  %v839_v32 = vld [vmem:[%s1700_s4 + $0x2a0] sm:$0xff] }
 0x205   :  { %1211 = vmatpush3.msra.mxu0 %v787_v33  ;;  %v823_v33 = vld [vmem:[%s1700_s4 + $0x220] sm:$0xff] }
 0x2a6   :  { %v665_v42 = vpop.f32.mrf.mxu0 }
 0x2a7   :  { %673 = vperm.xlu0 %1263, %v665_v42   ;;  %v689_v42 = vshrl.u32 %v688_v37, 7  ;;  %v821_v37 = vld [vmem:[%s1700_s4 + $0x210] sm:$0xff] }
 0x2a8   :  { %v1254_v47 = vpop.f32.mrf.mxu0 }
 0x2a9   :  { %v690_v47 = vsub.s32 %v687_v41, %v689_v42  ;;  %v867_v0 = vsub.s32 %v864_v63, %v689_v42  ;;  %v819_v41 = vld [vmem:[%s1700_s4 + $0x200] sm:$0xff] }
 0x322   :  { %v674_v40 = vpop.permute.xlu0 %673 }
 0x323   :  { %v676_v43 = vadd.f32 %v674_v40, %v669_v38  ;;  %v677_v44 = vadd.f32 %v674_v40, %v670_v39  ;;  %v836_v38 = vld [vmem:[%s1700_s4 + $0x288] sm:$0xff]  ;;  %v835_v40 = vld [vmem:[%s1700_s4 + $0x280] sm:$0xff] }
 0x324   :  { %v820_v39 = vld [vmem:[%s1700_s4 + $0x208] sm:$0xff] }
 0x325   :  { %v678_v45 = vmax.f32 %v676_v43, 0.0  ;;  %v679_v46 = vmax.f32 %v677_v44, 0.0 }
 0x327   :  { %v680_v48 = vmin.f32 %v678_v45, 1.0  ;;  %v681_v49 = vmin.f32 %v679_v46, 1.0  ;;  %v1138_v46 = vld [vmem:[%s1701_s5] ss:$0 sm:$0xff] }
 0x329   :  { %v684_v50 = vcombine.low %v680_v48, %v681_v49  ;;  %v724_v51 = vcombine.high %v680_v48, %v681_v49 }
 0x32b   :  { %v691_v52 = vrot.slane %v684_v50, %v690_v47  ;;  %v731_v53 = vrot.slane %v724_v51, %v690_v47  ;;  %v1106_v51 = vpop.permute.xlu1 %1105 }
 0x32d   :  { %v698_v19 = vrot.slane %v691_v52, %v690_v47  ;;  %v705_v22 = vcombine.high %v691_v52, %v691_v52  ;;  %v738_v55 = vrot.slane %v731_v53, %v690_v47  ;;  %v742_v56 = vcombine.high %v731_v53, %v731_v53  ;;  %v1140_v52 = vld [vmem:[%s1701_s5 + $0x1] ss:$0 sm:$0xff] }
 0x32f   :  { %704 = vst.msk [vmem:[#allocation2] ss:$2 sm:$0x3] %vm1567_vm3, %v698_v19  ;;  %v712_v57 = vrot.slane %v705_v22, %v690_v47  ;;  %v716_v58 = vcombine.high %v698_v19, %v698_v19  ;;  %741 = vst.msk [vmem:[#allocation2 + $0x5] ss:$2 sm:$0x3] %vm1567_vm3, %v738_v55  ;;  %v749_v59 = vrot.slane %v742_v56, %v690_v47 }
 0x330   :  { %v1112_v22 = vmul.f32 %v1140_v52, %v1106_v51 }
 0x331   :  { %715 = vst.msk [vmem:[#allocation2 + $0x4] ss:$2 sm:$0x3] %vm1567_vm3, %v712_v57  ;;  %719 = vst.msk [vmem:[#allocation2 + $0x8] ss:$2 sm:$0x3] %vm1567_vm3, %v716_v58  ;;  %v720_v62 = vcombine.high %v712_v57, %v712_v57 }
 0x332   :  { %752 = vst.msk [vmem:[#allocation2 + $0x9] ss:$2 sm:$0x3] %vm1567_vm3, %v749_v59  ;;  %v1141_v57 = vld [vmem:[%s1701_s5 + $0x2] ss:$0 sm:$0xff] }
 0x333   :  { %723 = vst.msk [vmem:[#allocation2 + $0x1] ss:$2 sm:$0x3] %vm1567_vm3, %v720_v62 }
 0x339   :  { %v1583_v6 = vld.sshfl [vmem:[#allocation2 + $0x8] sm:$0x33 pattern:$0x76325410] }
 0x33a   :  { %v753_v1 = vld [vmem:[#allocation2] sm:$0xff]  ;;  %v885_v10 = vcombine.high %v1583_v6, %v1583_v6 }
 0x33b   :  { %v868_v2 = vrot.slane %v753_v1, %v867_v0  ;;  %v861_v3 = vcombine.high %v753_v1, %v753_v1 }
 0x33d   :  { %v876_v4 = vcombine.high %v868_v2, %v868_v2  ;;  %v875_v5 = vrot.slane %v861_v3, %v867_v0 }
 0x33f   :  { %956 = vmatprep.mubr.f32.mxu1 %v876_v4  ;;  %v877_v8 = vcombine.high %v875_v5, %v875_v5 }
 0x340   :  { %957 = vmatmul.mubr.f32.vlgmr.msra.gmra.mxu1 %v868_v2 }
 0x341   :  { %1216 = vmatpush3.msra.mxu1 %v834_v7  ;;  %1026 = vmatprep.mubr.f32.mxu0 %v877_v8 }
 0x342   :  { %1217 = vmatprep.subr.mxu1 %v849_v9  ;;  %1096 = vmatprep.mubr.f32.mxu1 %v885_v10 }
 0x343   :  { %1027 = vmatmul.mubr.f32.vlgmr.msra.gmra.mxu0 %v875_v5  ;;  %1218 = vmatpush3.msra.mxu1 %v833_v11 }
 0x344   :  { %1219 = vmatprep.subr.mxu1 %v848_v12 }
 0x345   :  { %1220 = vmatpush3.msra.mxu1 %v832_v13 }
 0x346   :  { %1221 = vmatprep.subr.mxu1 %v847_v14 }
 0x347   :  { %1222 = vmatpush3.msra.mxu1 %v831_v15 }
 0x348   :  { %1223 = vmatprep.subr.mxu1 %v846_v16 }
 0x349   :  { %1224 = vmatpush3.msra.mxu1 %v830_v17 }
 0x34a   :  { %1225 = vmatprep.subr.mxu1 %v845_v18 }
 0x34b   :  { %1226 = vmatpush3.msra.mxu1 %v829_v20 }
 0x34c   :  { %1227 = vmatprep.subr.mxu1 %v844_v21 }
 0x34d   :  { %1228 = vmatpush3.msra.mxu1 %v828_v23 }
 0x34e   :  { %1229 = vmatprep.subr.mxu1 %v843_v24 }
 0x34f   :  { %1230 = vmatpush3.msra.mxu1 %v827_v25 }
 0x350   :  { %1231 = vmatprep.subr.mxu1 %v842_v26 }
 0x351   :  { %1232 = vmatpush3.msra.mxu1 %v826_v27 }
 0x352   :  { %1233 = vmatprep.subr.mxu1 %v841_v28 }
 0x353   :  { %1234 = vmatpush3.msra.mxu1 %v825_v29 }
 0x354   :  { %1235 = vmatprep.subr.mxu1 %v840_v30 }
 0x355   :  { %1236 = vmatpush3.msra.mxu1 %v824_v31 }
 0x356   :  { %1237 = vmatprep.subr.mxu1 %v839_v32 }
 0x357   :  { %1238 = vmatpush3.msra.mxu1 %v823_v33 }
 0x358   :  { %1239 = vmatprep.subr.mxu1 %v838_v34 }
 0x359   :  { %1240 = vmatpush3.msra.mxu1 %v822_v35 }
 0x35a   :  { %1241 = vmatprep.subr.mxu1 %v837_v36 }
 0x35b   :  { %1242 = vmatpush3.msra.mxu1 %v821_v37 }
 0x35c   :  { %1243 = vmatprep.subr.mxu1 %v836_v38 }
 0x35d   :  { %1244 = vmatpush3.msra.mxu1 %v820_v39 }
 0x35e   :  { %1245 = vmatprep.subr.mxu1 %v835_v40 }
 0x35f   :  { %1246 = vmatpush3.msra.mxu1 %v819_v41 }
 0x360   :  { %1097 = vmatmul.mubr.f32.vlgmr.msra.gmra.mxu1 %v1583_v6 }
 0x400   :  { %v1177_v42 = vpop.f32.mrf.mxu1 }
 0x402   :  { %v1178_v43 = vpop.f32.mrf.mxu1 }
 0x403   :  { %v1212_v44 = vpop.f32.mrf.mxu0  ;;  %v1179_v45 = vadd.f32 %v1178_v43, %v1177_v42 }
 0x405   :  { %v1213_v47 = vpop.f32.mrf.mxu0  ;;  %v959_v48 = vadd.f32 %v1179_v45, %v1138_v46 }
 0x406   :  { %v1214_v49 = vadd.f32 %v1213_v47, %v1212_v44 }
 0x408   :  { %v1029_v54 = vadd.f32 %v1214_v49, %v959_v48 }
 0x420   :  { %v1247_v50 = vpop.f32.mrf.mxu1 }
 0x422   :  { %v1248_v53 = vpop.f32.mrf.mxu1 }
 0x423   :  { %v1249_v19 = vadd.f32 %v1248_v53, %v1247_v50 }
 0x425   :  { %v1099_v55 = vadd.f32 %v1249_v19, %v1029_v54 }
 0x427   :  { %v1113_v56 = vadd.f32 %v1112_v22, %v1099_v55 }
 0x429   :  { %v1114_v58 = vmax.f32 %v1113_v56, 0.0 }
 0x42b   :  { %v1119_v59 = vmul.f32 %v1141_v57, %v1114_v58 }
 0x42d   :  { %v1121_v60 = vsel %vm1120_vm4, %v1119_v59, 0.0 }
 0x42e   :  { %1122 = vadd.xlane.f32.xlu1 %v1121_v60 }
 0x4b7   :  { %v1123_v62 = vpop.xlane.xlu1 %1122 }
 0x4b8   :  { %v1128_v63 = vadd.f32 %v1142_v61, %v1123_v62 }
 0x4ba   :  { %1130 = vst.msk [vmem:[%s1702_s6] sm:$0x3] %vm1129_vm5, %v1128_v63 }
 0x4bb   :  { %1135 = vsyncpa [#allocation4], 1 }

</bundles_post_ra>
